<compile_context>
chip_gen: v6e
topology: v6e:2x2x1
jax: 0.10.0
libtpu: 0.0.40
codegen_flags: <defaults>
</compile_context>

<pallas_src>
import functools

import jax
import jax.numpy as jnp
from jax.experimental import pallas as pl
from jax.experimental.pallas import tpu as pltpu


def _round_up(x, m):
    return ((x + m - 1) // m) * m


@functools.lru_cache(maxsize=1)
def _tpu_generation():
    """Best-effort chip detection -> (num_tensorcores_per_device, is_v5e)."""
    try:
        kind = jax.devices()[0].device_kind.lower()
    except Exception:  # non-TPU / unknown: conservative defaults
        return 1, False
    is_v5e = ("v5e" in kind) or ("v5 lite" in kind) or ("v5lite" in kind)
    # v4 / v5p / v7x expose two TensorCores behind one device; v5e/v6e have one.
    multi_tc = ("v4" in kind) or ("v5p" in kind) or ("v7" in kind) or ("7x" in kind)
    return (2 if multi_tc else 1), is_v5e


def _mlp_kernel(x_ref, w0_ref, b0_ref, w1_ref, b1_ref, w2_ref, b2_ref, o_ref,
                *, relu_in_compute_dtype):
    """Fused 3-layer MLP: relu(relu(x@W0+b0)@W1+b1)@W2+b2, f32 accumulation on the MXU."""
    cdt = w0_ref.dtype                      # compute dtype (bf16 by default)
    x = x_ref[...].astype(cdt)              # in-kernel cast: no extra wrapper kernel

    def act(h):
        if relu_in_compute_dtype:           # bf16 VALU path (v6e/v7x): cast then ReLU
            return jnp.maximum(h.astype(cdt), 0)
        return jnp.maximum(h, 0.0).astype(cdt)  # v5e: ReLU in f32, then cast

    h = jnp.dot(x, w0_ref[...], preferred_element_type=jnp.float32) + b0_ref[...]
    h = act(h)
    h = jnp.dot(h, w1_ref[...], preferred_element_type=jnp.float32) + b1_ref[...]
    h = act(h)
    out = jnp.dot(h, w2_ref[...], preferred_element_type=jnp.float32) + b2_ref[...]
    o_ref[...] = out.astype(o_ref.dtype)


def prepare_qnetwork_params(params, compute_dtype=jnp.bfloat16, lane_pad=128):
    """One-time weight preparation (keep OUT of the per-step hot path).

    - casts W0/W1/W2 to the compute dtype (bf16 by default; pass jnp.float32 for
      bit-closer training numerics),
    - zero-pads the last layer to a lane-dense multiple of 128 columns so the kernel
      writeback uses full, unmasked vector stores,
    - keeps biases in f32 (added to the f32 MXU accumulator).

    Returns (prepared_params_dict, action_size).
    """
    w0, b0 = params["w0"], params["b0"]
    w1, b1 = params["w1"], params["b1"]
    w2, b2 = params["w2"], params["b2"]
    A = w2.shape[1]
    A_pad = _round_up(max(A, lane_pad), lane_pad)
    w2p = jnp.zeros((w2.shape[0], A_pad), w2.dtype).at[:, :A].set(w2)
    b2p = jnp.zeros((1, A_pad), b2.dtype).at[:, :A].set(b2)
    prep = {
        "w0": w0.astype(compute_dtype), "b0": b0.astype(jnp.float32),
        "w1": w1.astype(compute_dtype), "b1": b1.astype(jnp.float32),
        "w2": w2p.astype(compute_dtype), "b2": b2p.astype(jnp.float32),
    }
    return prep, A


def _choose_batch_tile(B, align, batch_tile, num_tensorcores):
    """One full-batch step on single-TC chips; split across TensorCores only when each
    core gets >= 128 rows (one full MXU M-tile); cap at the per-generation tile size."""
    if B <= batch_tile:
        if num_tensorcores >= 2 and B >= 128 * num_tensorcores:
            tb = _round_up(pl.cdiv(B, num_tensorcores), align)
            return max(128, min(batch_tile, tb))
        return B  # full-array block on the batch dim: always legal, grid=(1,)
    return batch_tile


def _apply_padded(state, prep):
    """Hot path: one pallas_call; returns lane-padded [B, A_pad] Q-values
    (padded columns are exactly zero since W2/b2 are zero-padded)."""
    B, S = state.shape
    w0, b0 = prep["w0"], prep["b0"]
    w1, b1 = prep["w1"], prep["b1"]
    w2, b2 = prep["w2"], prep["b2"]
    H0, H1, A_pad = w0.shape[1], w1.shape[1], w2.shape[1]

    num_cores, is_v5e = _tpu_generation()
    compute_dtype = w0.dtype
    batch_tile = 128 if is_v5e else 256          # 256-tall MXU on v6e/v7x; 128 on v5e
    align = 16 if compute_dtype == jnp.bfloat16 else 8
    tb = _choose_batch_tile(B, align, batch_tile, num_cores)
    grid = (pl.cdiv(B, tb),)

    # Weights/biases are grid-invariant full-array blocks (constant index_map: the
    # pipeline revisits the same VMEM block, so they are DMA'd effectively once).
    # At ~100 KiB total the default buffering is fine; single-buffering / K- and
    # N-tiling only matters once hidden sizes grow.
    # TODO(synk): for hidden >= 2048, tile the K/N weight dims, single-buffer the
    # constant blocks, and size tiles / vmem_limit_bytes against v7x's 64 MiB VMEM.
    full = lambda shape: pl.BlockSpec(shape, lambda i: (0,) * len(shape))

    kernel = functools.partial(_mlp_kernel, relu_in_compute_dtype=not is_v5e)

    return pl.pallas_call(
        kernel,
        out_shape=jax.ShapeDtypeStruct((B, A_pad), jnp.float32),
        grid_spec=pltpu.PrefetchScalarGridSpec(
            num_scalar_prefetch=0,
            grid=grid,
            in_specs=[
                pl.BlockSpec((tb, S), lambda i: (i, 0)),   # x tile over batch (cast in-kernel)
                full((S, H0)),  full((1, H0)),             # layer 0
                full((H0, H1)), full((1, H1)),             # layer 1
                full((H1, A_pad)), full((1, A_pad)),       # layer 2 (no ReLU), lane-padded
            ],
            out_specs=pl.BlockSpec((tb, A_pad), lambda i: (i, 0)),
        ),
        compiler_params=pltpu.CompilerParams(
            dimension_semantics=("parallel",),
        ),
    )(state, w0, b0, w1, b1, w2, b2)


# Hot-path entry point: returns the lane-padded [B, 128] Q-value block.
qnetwork_apply = jax.jit(_apply_padded)


@functools.partial(jax.jit, static_argnames=("action_size",))
def qnetwork_forward(state, prep, action_size):
    """Convenience wrapper matching torch semantics: [B, action_size] Q-values.
    Jitted as a whole so the trailing slice fuses with any downstream consumer."""
    return _apply_padded(state, prep)[:, :action_size]


def init_qnetwork_params(key, state_size, action_size, hidden_layers):
    """Init matching torch.nn.Linear's default distribution U(-1/sqrt(fan_in), 1/sqrt(fan_in)).
    (torch.manual_seed bit-exact RNG is not reproduced; only the distribution is matched.)"""
    sizes = [state_size] + list(hidden_layers) + [action_size]
    params = {}
    for idx, (fan_in, fan_out) in enumerate(zip(sizes[:-1], sizes[1:])):
        key, kw, kb = jax.random.split(key, 3)
        bound = 1.0 / (fan_in ** 0.5)
        params[f"w{idx}"] = jax.random.uniform(
            kw, (fan_in, fan_out), jnp.float32, minval=-bound, maxval=bound)
        params[f"b{idx}"] = jax.random.uniform(
            kb, (1, fan_out), jnp.float32, minval=-bound, maxval=bound)
    return params


def qnetwork_reference(state, params, compute_dtype=jnp.float32):
    """Pure-JAX reference of the same forward pass (optionally in the kernel's compute dtype)."""
    cd = compute_dtype
    h = state.astype(cd)
    h = jnp.dot(h, params["w0"].astype(cd), preferred_element_type=jnp.float32) + params["b0"]
    h = jnp.maximum(h, 0.0).astype(cd)
    h = jnp.dot(h, params["w1"].astype(cd), preferred_element_type=jnp.float32) + params["b1"]
    h = jnp.maximum(h, 0.0).astype(cd)
    return jnp.dot(h, params["w2"].astype(cd), preferred_element_type=jnp.float32) + params["b2"]


if __name__ == "__main__":
    key = jax.random.PRNGKey(0)
    k_state, k_params = jax.random.split(key)

    # Small, forward-consistent shapes: 256 states of dim 16, 2 hidden layers of 128, 4 actions.
    state_size, action_size = 16, 4
    hidden_layers = [128, 128]
    batch = 256

    params = init_qnetwork_params(k_params, state_size, action_size, hidden_layers)
    prep, A = prepare_qnetwork_params(params)          # one-time: cast + lane-pad weights
    prep = jax.block_until_ready(prep)

    state = jax.random.normal(k_state, (batch, state_size), jnp.float32)

    # Hot path: single pallas_call, lane-padded output.
    out_padded = jax.block_until_ready(qnetwork_apply(state, prep))
    assert out_padded.shape[0] == batch and out_padded.shape[1] % 128 == 0
    out = out_padded[:, :A]
    assert out.shape == (batch, action_size)

    # Check against a reference using the same bf16-operand / f32-accumulate recipe...
    ref_bf16 = qnetwork_reference(state, params, compute_dtype=jnp.bfloat16)
    assert jnp.allclose(out, ref_bf16, atol=1e-2, rtol=1e-2), \
        "Pallas output mismatch vs matched-precision reference"
    # ...and, loosely, against the full-f32 reference (bf16 rounding only).
    ref_f32 = qnetwork_reference(state, params, compute_dtype=jnp.float32)
    assert jnp.allclose(out, ref_f32, atol=1e-1, rtol=1e-1), \
        "Pallas output diverges from f32 reference beyond bf16 rounding"

    # Ragged batch (B=300): exercises the partial final batch tile (rows past the end
    # of the last block are computed on unspecified data and dropped on writeback).
    state_ragged = jax.random.normal(k_state, (300, state_size), jnp.float32)
    out_r = jax.block_until_ready(qnetwork_forward(state_ragged, prep, action_size))
    assert out_r.shape == (300, action_size)
    ref_r = qnetwork_reference(state_ragged, params, compute_dtype=jnp.bfloat16)
    assert jnp.allclose(out_r, ref_r, atol=1e-2, rtol=1e-2), \
        "Pallas output mismatch on ragged batch"

    print("KERNEL_OK")
</pallas_src>

<mosaic_0001>
module attributes {stable_mosaic.version = 11 : i64} {
  func.func @_mlp_kernel(%arg0: i32, %arg1: memref<256x16xf32, #tpu.memory_space<vmem>>, %arg2: memref<16x128xbf16, #tpu.memory_space<vmem>>, %arg3: memref<1x128xf32, #tpu.memory_space<vmem>>, %arg4: memref<128x128xbf16, #tpu.memory_space<vmem>>, %arg5: memref<1x128xf32, #tpu.memory_space<vmem>>, %arg6: memref<128x128xbf16, #tpu.memory_space<vmem>>, %arg7: memref<1x128xf32, #tpu.memory_space<vmem>>, %arg8: memref<256x128xf32, #tpu.memory_space<vmem>>) attributes {dimension_semantics = [#tpu.dimension_semantics<parallel>], iteration_bounds = array<i64: 1>, scalar_prefetch = 0 : i64, scratch_operands = 0 : i64, tpu.core_type = #tpu.core_type<tc>, window_params = [{transform_indices = @transform_0, window_bounds = array<i64: 256, 16>}, {pipeline_mode = #tpu.pipeline_mode<synchronous>, transform_indices = @transform_1, window_bounds = array<i64: 16, 128>}, {pipeline_mode = #tpu.pipeline_mode<synchronous>, transform_indices = @transform_2, window_bounds = array<i64: 1, 128>}, {pipeline_mode = #tpu.pipeline_mode<synchronous>, transform_indices = @transform_3, window_bounds = array<i64: 128, 128>}, {pipeline_mode = #tpu.pipeline_mode<synchronous>, transform_indices = @transform_4, window_bounds = array<i64: 1, 128>}, {pipeline_mode = #tpu.pipeline_mode<synchronous>, transform_indices = @transform_5, window_bounds = array<i64: 128, 128>}, {pipeline_mode = #tpu.pipeline_mode<synchronous>, transform_indices = @transform_6, window_bounds = array<i64: 1, 128>}, {transform_indices = @transform_7, window_bounds = array<i64: 256, 128>}]} {
    %c0 = arith.constant 0 : index
    %c0_0 = arith.constant 0 : index
    %0 = vector.load %arg1[%c0, %c0_0] : memref<256x16xf32, #tpu.memory_space<vmem>>, vector<256x16xf32>
    %1 = arith.truncf %0 : vector<256x16xf32> to vector<256x16xbf16>
    %c0_1 = arith.constant 0 : index
    %c0_2 = arith.constant 0 : index
    %2 = vector.load %arg2[%c0_1, %c0_2] : memref<16x128xbf16, #tpu.memory_space<vmem>>, vector<16x128xbf16>
    %cst = arith.constant dense<0.000000e+00> : vector<256x128xf32>
    %3 = tpu.matmul %1, %2, %cst {dimension_numbers = #tpu.dot_dimension_numbers<[1], [0], [0], [1], [0, 0, 1, 1], [], []>} : vector<256x16xbf16>, vector<16x128xbf16>, vector<256x128xf32> -> vector<256x128xf32>
    %c0_3 = arith.constant 0 : index
    %c0_4 = arith.constant 0 : index
    %4 = vector.load %arg3[%c0_3, %c0_4] : memref<1x128xf32, #tpu.memory_space<vmem>>, vector<1x128xf32>
    %5 = vector.broadcast %4 : vector<1x128xf32> to vector<256x128xf32>
    %6 = arith.addf %3, %5 : vector<256x128xf32>
    %7 = arith.truncf %6 : vector<256x128xf32> to vector<256x128xbf16>
    %cst_5 = arith.constant 0.000000e+00 : bf16
    %8 = vector.broadcast %cst_5 : bf16 to vector<256x128xbf16>
    %9 = arith.maximumf %7, %8 : vector<256x128xbf16>
    %c0_6 = arith.constant 0 : index
    %c0_7 = arith.constant 0 : index
    %10 = vector.load %arg4[%c0_6, %c0_7] : memref<128x128xbf16, #tpu.memory_space<vmem>>, vector<128x128xbf16>
    %cst_8 = arith.constant dense<0.000000e+00> : vector<256x128xf32>
    %11 = tpu.matmul %9, %10, %cst_8 {dimension_numbers = #tpu.dot_dimension_numbers<[1], [0], [0], [1], [0, 0, 1, 1], [], []>} : vector<256x128xbf16>, vector<128x128xbf16>, vector<256x128xf32> -> vector<256x128xf32>
    %c0_9 = arith.constant 0 : index
    %c0_10 = arith.constant 0 : index
    %12 = vector.load %arg5[%c0_9, %c0_10] : memref<1x128xf32, #tpu.memory_space<vmem>>, vector<1x128xf32>
    %13 = vector.broadcast %12 : vector<1x128xf32> to vector<256x128xf32>
    %14 = arith.addf %11, %13 : vector<256x128xf32>
    %15 = arith.truncf %14 : vector<256x128xf32> to vector<256x128xbf16>
    %cst_11 = arith.constant 0.000000e+00 : bf16
    %16 = vector.broadcast %cst_11 : bf16 to vector<256x128xbf16>
    %17 = arith.maximumf %15, %16 : vector<256x128xbf16>
    %c0_12 = arith.constant 0 : index
    %c0_13 = arith.constant 0 : index
    %18 = vector.load %arg6[%c0_12, %c0_13] : memref<128x128xbf16, #tpu.memory_space<vmem>>, vector<128x128xbf16>
    %cst_14 = arith.constant dense<0.000000e+00> : vector<256x128xf32>
    %19 = tpu.matmul %17, %18, %cst_14 {dimension_numbers = #tpu.dot_dimension_numbers<[1], [0], [0], [1], [0, 0, 1, 1], [], []>} : vector<256x128xbf16>, vector<128x128xbf16>, vector<256x128xf32> -> vector<256x128xf32>
    %c0_15 = arith.constant 0 : index
    %c0_16 = arith.constant 0 : index
    %20 = vector.load %arg7[%c0_15, %c0_16] : memref<1x128xf32, #tpu.memory_space<vmem>>, vector<1x128xf32>
    %21 = vector.broadcast %20 : vector<1x128xf32> to vector<256x128xf32>
    %22 = arith.addf %19, %21 : vector<256x128xf32>
    %c0_17 = arith.constant 0 : index
    %c0_18 = arith.constant 0 : index
    %23 = vector.load %arg8[%c0_17, %c0_18] : memref<256x128xf32, #tpu.memory_space<vmem>>, vector<256x128xf32>
    tpu.vector_store %arg8[%c0_17, %c0_18], %22 {strides = array<i32>} : memref<256x128xf32, #tpu.memory_space<vmem>>, vector<256x128xf32>,
    return
  }
  func.func @transform_0(%arg0: i32) -> (i32, i32) {
    %c0_i32 = arith.constant 0 : i32
    %c0_i32_0 = arith.constant 0 : i32
    return %arg0, %c0_i32 : i32, i32
  }
  func.func @transform_1(%arg0: i32) -> (i32, i32) {
    %c0_i32 = arith.constant 0 : i32
    %c0_i32_0 = arith.constant 0 : i32
    %c0_i32_1 = arith.constant 0 : i32
    return %c0_i32, %c0_i32_0 : i32, i32
  }
  func.func @transform_2(%arg0: i32) -> (i32, i32) {
    %c0_i32 = arith.constant 0 : i32
    %c0_i32_0 = arith.constant 0 : i32
    %c0_i32_1 = arith.constant 0 : i32
    return %c0_i32, %c0_i32_0 : i32, i32
  }
  func.func @transform_3(%arg0: i32) -> (i32, i32) {
    %c0_i32 = arith.constant 0 : i32
    %c0_i32_0 = arith.constant 0 : i32
    %c0_i32_1 = arith.constant 0 : i32
    return %c0_i32, %c0_i32_0 : i32, i32
  }
  func.func @transform_4(%arg0: i32) -> (i32, i32) {
    %c0_i32 = arith.constant 0 : i32
    %c0_i32_0 = arith.constant 0 : i32
    %c0_i32_1 = arith.constant 0 : i32
    return %c0_i32, %c0_i32_0 : i32, i32
  }
  func.func @transform_5(%arg0: i32) -> (i32, i32) {
    %c0_i32 = arith.constant 0 : i32
    %c0_i32_0 = arith.constant 0 : i32
    %c0_i32_1 = arith.constant 0 : i32
    return %c0_i32, %c0_i32_0 : i32, i32
  }
  func.func @transform_6(%arg0: i32) -> (i32, i32) {
    %c0_i32 = arith.constant 0 : i32
    %c0_i32_0 = arith.constant 0 : i32
    %c0_i32_1 = arith.constant 0 : i32
    return %c0_i32, %c0_i32_0 : i32, i32
  }
  func.func @transform_7(%arg0: i32) -> (i32, i32) {
    %c0_i32 = arith.constant 0 : i32
    %c0_i32_0 = arith.constant 0 : i32
    return %arg0, %c0_i32 : i32, i32
  }
}

</mosaic_0001>

<bundles_post_ra>
// kernel: _apply_padded.1
= control target key start
LH: loop header
LB: loop body
LE: loop exit
PB: predicated region body
PF: predicated region fallthrough
CT: control target
= control target key end

     0   :  { %vm91_vm0 = vcmask 130048   ;;  %s1512_s0 = inlined_call_operand.vmem [shape: f32[256,16], index: 0, kind: input, shape index: {}]   ;;  %s1513_s1 = inlined_call_operand.vmem [shape: bf16[16,128], index: 1, kind: input, shape index: {}]   ;;  %s1514_s2 = inlined_call_operand.vmem [shape: f32[1,128], index: 2, kind: input, shape index: {}]   ;;  %s1515_s3 = inlined_call_operand.vmem [shape: bf16[128,128], index: 3, kind: input, shape index: {}]   ;;  %s1516_s4 = inlined_call_operand.vmem [shape: f32[1,128], index: 4, kind: input, shape index: {}]   ;;  %s1517_s5 = inlined_call_operand.vmem [shape: bf16[128,128], index: 5, kind: input, shape index: {}]   ;;  %s1518_s6 = inlined_call_operand.vmem [shape: f32[1,128], index: 6, kind: input, shape index: {}]   ;;  %s1519_s7 = inlined_call_operand.hbm [shape: f32[256,128], index: 7, kind: output, shape index: {}]  }
   0x1   :  { %v1114_v0 = vld [vmem:[%s1513_s1] sm:$0xff]   ;;  %v29_v2 = vld [vmem:[%s1512_s0 + $0x8] sm:$0xff]  ;;  %v30_v3 = vld [vmem:[%s1512_s0 + $0x10] sm:$0xff] }
   0x2   :  { %v28_v1 = vld [vmem:[%s1512_s0] sm:$0xff]  ;;  %978 = vmatprep.subr.bf16.mxu0 %v1114_v0  ;;  %v31_v5 = vld [vmem:[%s1512_s0 + $0x18] sm:$0xff]  ;;  %v33_v7 = vld [vmem:[%s1512_s0 + $0x28] sm:$0xff]  ;;  %1108 = vmatprep.subr.bf16.mxu1 %v1114_v0 }
   0x3   :  { %v60_v4 = vpack.c.bf16 %v29_v2, %v28_v1  ;;  %v32_v6 = vld [vmem:[%s1512_s0 + $0x20] sm:$0xff]  ;;  %979 = vmatpush3.bf16.msra.mxu0 %v1114_v0  ;;  %v61_v8 = vpack.c.bf16 %v31_v5, %v30_v3  ;;  %1109 = vmatpush3.bf16.msra.mxu1 %v1114_v0  ;;  %v34_v10 = vld [vmem:[%s1512_s0 + $0x30] sm:$0xff]  ;;  %v35_v11 = vld [vmem:[%s1512_s0 + $0x38] sm:$0xff] }
   0x4   :  { %v62_v9 = vpack.c.bf16 %v33_v7, %v32_v6  ;;  %v44_v12 = vld [vmem:[%s1512_s0 + $0x80] sm:$0xff]  ;;  %v45_v13 = vld [vmem:[%s1512_s0 + $0x88] sm:$0xff]  ;;  %v46_v15 = vld [vmem:[%s1512_s0 + $0x90] sm:$0xff]  ;;  %v63_v23 = vpack.c.bf16 %v35_v11, %v34_v10 }
   0x5   :  { %980 = vmatprep.mubr.msk.bf16.mxu0 %vm91_vm0, %v60_v4  ;;  %v68_v14 = vpack.c.bf16 %v45_v13, %v44_v12  ;;  %v47_v16 = vld [vmem:[%s1512_s0 + $0x98] sm:$0xff]  ;;  %v48_v17 = vld [vmem:[%s1512_s0 + $0xa0] sm:$0xff]  ;;  %v37_v19 = vld [vmem:[%s1512_s0 + $0x48] sm:$0xff] }
   0x6   :  { %981 = vmatmul.mubr.msk.bf16.vlgmr.msra.gmra.mxu0 %vm91_vm0, %v61_v8  ;;  %v36_v18 = vld [vmem:[%s1512_s0 + $0x40] sm:$0xff]  ;;  %v69_v20 = vpack.c.bf16 %v47_v16, %v46_v15  ;;  %v49_v21 = vld [vmem:[%s1512_s0 + $0xa8] sm:$0xff]  ;;  %v50_v24 = vld [vmem:[%s1512_s0 + $0xb0] sm:$0xff] }
   0x7   :  { %984 = vmatprep.mubr.msk.bf16.mxu0 %vm91_vm0, %v62_v9  ;;  %996 = vmatprep.mubr.msk.bf16.mxu1 %vm91_vm0, %v68_v14  ;;  %v70_v22 = vpack.c.bf16 %v49_v21, %v48_v17  ;;  %v51_v25 = vld [vmem:[%s1512_s0 + $0xb8] sm:$0xff]  ;;  %v64_v26 = vpack.c.bf16 %v37_v19, %v36_v18  ;;  %v52_v27 = vld [vmem:[%s1512_s0 + $0xc0] sm:$0xff]  ;;  %v53_v28 = vld [vmem:[%s1512_s0 + $0xc8] sm:$0xff] }
   0x8   :  { %997 = vmatmul.mubr.msk.bf16.vlgmr.msra.gmra.mxu1 %vm91_vm0, %v69_v20  ;;  %v1115_v29 = vld [vmem:[%s1515_s3 + $0x38] sm:$0xff]   ;;  %v38_v30 = vld [vmem:[%s1512_s0 + $0x50] sm:$0xff]  ;;  %v40_v33 = vld [vmem:[%s1512_s0 + $0x60] sm:$0xff]  ;;  %v71_v34 = vpack.c.bf16 %v51_v25, %v50_v24  ;;  %v72_v36 = vpack.c.bf16 %v53_v28, %v52_v27 }
   0x9   :  { %1000 = vmatprep.mubr.msk.bf16.mxu1 %vm91_vm0, %v70_v22  ;;  %v39_v31 = vld [vmem:[%s1512_s0 + $0x58] sm:$0xff]  ;;  %v1116_v32 = vld [vmem:[%s1515_s3 + $0x30] sm:$0xff]   ;;  %1012 = vmatprep.subr.bf16.mxu1 %v1115_v29  ;;  %v41_v35 = vld [vmem:[%s1512_s0 + $0x68] sm:$0xff] }
   0xa   :  { %1013 = vmatpush3.bf16.msra.mxu1 %v1115_v29  ;;  %v1117_v37 = vld [vmem:[%s1515_s3 + $0x28] sm:$0xff]   ;;  %v54_v38 = vld [vmem:[%s1512_s0 + $0xd0] sm:$0xff]  ;;  %v55_v39 = vld [vmem:[%s1512_s0 + $0xd8] sm:$0xff]  ;;  %v65_v40 = vpack.c.bf16 %v39_v31, %v38_v30  ;;  %v66_v44 = vpack.c.bf16 %v41_v35, %v40_v33 }
   0xb   :  { %1014 = vmatprep.subr.bf16.mxu1 %v1116_v32  ;;  %v56_v41 = vld [vmem:[%s1512_s0 + $0xe0] sm:$0xff]  ;;  %v57_v42 = vld [vmem:[%s1512_s0 + $0xe8] sm:$0xff]  ;;  %v42_v45 = vld [vmem:[%s1512_s0 + $0x70] sm:$0xff]  ;;  %v73_v47 = vpack.c.bf16 %v55_v39, %v54_v38 }
   0xc   :  { %v1118_v43 = vld [vmem:[%s1515_s3 + $0x20] sm:$0xff]   ;;  %v43_v46 = vld [vmem:[%s1512_s0 + $0x78] sm:$0xff]  ;;  %v74_v48 = vpack.c.bf16 %v57_v42, %v56_v41 }
   0xd   :  { %v1119_v49 = vld [vmem:[%s1515_s3 + $0x18] sm:$0xff]  }
   0xe   :  { %985 = vmatmul.mubr.msk.bf16.gmra.mxu0 %vm91_vm0, %v63_v23  ;;  %1015 = vmatpush3.bf16.msra.mxu1 %v1116_v32 }
   0xf   :  { %988 = vmatprep.mubr.msk.bf16.mxu0 %vm91_vm0, %v64_v26  ;;  %1016 = vmatprep.subr.bf16.mxu1 %v1117_v37 }
  0x10   :  { %1001 = vmatmul.mubr.msk.bf16.gmra.mxu1 %vm91_vm0, %v71_v34 }
  0x11   :  { %1004 = vmatprep.mubr.msk.bf16.mxu1 %vm91_vm0, %v72_v36 }
  0x12   :  { %1017 = vmatpush3.bf16.msra.mxu1 %v1117_v37 }
  0x13   :  { %1018 = vmatprep.subr.bf16.mxu1 %v1118_v43 }
  0x16   :  { %989 = vmatmul.mubr.msk.bf16.gmra.mxu0 %vm91_vm0, %v65_v40 }
  0x17   :  { %992 = vmatprep.mubr.msk.bf16.mxu0 %vm91_vm0, %v66_v44 }
  0x18   :  { %12 = vsyncpa [#allocation3], 0  ;;  %v67_v50 = vpack.c.bf16 %v43_v46, %v42_v45  ;;  %1005 = vmatmul.mubr.msk.bf16.gmra.mxu1 %vm91_vm0, %v73_v47  ;;  %v58_v51 = vld [vmem:[%s1512_s0 + $0xf0] sm:$0xff]  ;;  %v59_v52 = vld [vmem:[%s1512_s0 + $0xf8] sm:$0xff]  ;;  %v1153_v15 = vmov 0  }
  0x19   :  { %1008 = vmatprep.mubr.msk.bf16.mxu1 %vm91_vm0, %v74_v48  ;;  %1019 = vmatpush3.bf16.msra.mxu1 %v1118_v43  ;;  %v75_v53 = vpack.c.bf16 %v59_v52, %v58_v51  ;;  %v1120_v54 = vld [vmem:[%s1515_s3 + $0x10] sm:$0xff]   ;;  %v1121_v55 = vld [vmem:[%s1515_s3 + $0x8] sm:$0xff]   ;;  %v1122_v56 = vld [vmem:[%s1515_s3] sm:$0xff]  }
  0x1a   :  { %1020 = vmatprep.subr.bf16.mxu1 %v1119_v49  ;;  %v1123_v57 = vld [vmem:[%s1517_s5 + $0x38] sm:$0xff]   ;;  %v1124_v58 = vld [vmem:[%s1517_s5 + $0x30] sm:$0xff]   ;;  %v1125_v59 = vld [vmem:[%s1517_s5 + $0x28] sm:$0xff]  }
  0x1b   :  { %1060 = vmatprep.subr.bf16.mxu0 %v1123_v57  ;;  %v1126_v60 = vld [vmem:[%s1517_s5 + $0x20] sm:$0xff]   ;;  %v1127_v61 = vld [vmem:[%s1517_s5 + $0x18] sm:$0xff]  }
  0x1c   :  { %1061 = vmatpush3.bf16.msra.mxu0 %v1123_v57  ;;  %v1354_v0 = vld [vmem:[%s1514_s2] ss:$0 sm:$0xff] }
  0x1d   :  { %1021 = vmatpush3.bf16.msra.mxu1 %v1119_v49  ;;  %1062 = vmatprep.subr.bf16.mxu0 %v1124_v58 }
  0x1e   :  { %993 = vmatmul.mubr.msk.bf16.gmra.mxu0 %vm91_vm0, %v67_v50  ;;  %1022 = vmatprep.subr.bf16.mxu1 %v1120_v54 }
  0x20   :  { %1009 = vmatmul.mubr.msk.bf16.gmra.mxu1 %vm91_vm0, %v75_v53  ;;  %1063 = vmatpush3.bf16.msra.mxu0 %v1124_v58 }
  0x21   :  { %1023 = vmatpush3.bf16.msra.mxu1 %v1120_v54  ;;  %1064 = vmatprep.subr.bf16.mxu0 %v1125_v59 }
  0x22   :  { %1024 = vmatprep.subr.bf16.mxu1 %v1121_v55 }
  0x24   :  { %1065 = vmatpush3.bf16.msra.mxu0 %v1125_v59 }
  0x25   :  { %1025 = vmatpush3.bf16.msra.mxu1 %v1121_v55  ;;  %1066 = vmatprep.subr.bf16.mxu0 %v1126_v60 }
  0x26   :  { %1026 = vmatprep.subr.bf16.mxu1 %v1122_v56 }
  0x28   :  { %1067 = vmatpush3.bf16.msra.mxu0 %v1126_v60 }
  0x29   :  { %1027 = vmatpush3.bf16.msra.mxu1 %v1122_v56  ;;  %1068 = vmatprep.subr.bf16.mxu0 %v1127_v61 }
  0x2c   :  { %1069 = vmatpush3.bf16.msra.mxu0 %v1127_v61 }
  0xc6   :  { %v982_v62 = vpop.f32.mrf.mxu0 }
  0xc7   :  { %v183_v4 = vadd.f32 %v982_v62, %v1354_v0 }
  0xc8   :  { %v174_v63 = vpop.f32.mrf.mxu0  ;;  %v1356_v2 = vpop.f32.mrf.mxu1 }
  0xc9   :  { %v175_v7 = vadd.f32 %v1354_v0, %v174_v63 }
  0xca   :  { %v983_v1 = vpop.f32.mrf.mxu0  ;;  %v238_v6 = vpop.f32.mrf.mxu1 }
  0xcb   :  { %v186_v3 = vadd.f32 %v983_v1, %v1354_v0  ;;  %v239_v46 = vadd.f32 %v1354_v0, %v238_v6 }
  0xcc   :  { %v177_v5 = vpop.f32.mrf.mxu0  ;;  %v999_v11 = vpop.f32.mrf.mxu1 }
  0xcd   :  { %v178_v8 = vadd.f32 %v1354_v0, %v177_v5  ;;  %v302_v9 = vpack.c.bf16 %v186_v3, %v183_v4  ;;  %v247_v3 = vadd.f32 %v1356_v2, %v1354_v0  ;;  %v250_v4 = vadd.f32 %v999_v11, %v1354_v0 }
  0xce   :  { %v986_v10 = vpop.f32.mrf.mxu0  ;;  %v241_v14 = vpop.f32.mrf.mxu1 }
  0xcf   :  { %v301_v12 = vpack.c.bf16 %v178_v8, %v175_v7  ;;  %v318_v17 = vmax.bf16 %v1153_v15, %v302_v9  ;;  %v199_v21 = vadd.f32 %v986_v10, %v1354_v0  ;;  %v242_v48 = vadd.f32 %v1354_v0, %v241_v14 }
  0xd0   :  { %v190_v13 = vpop.f32.mrf.mxu0  ;;  %v1364_v19 = vpop.f32.mrf.mxu1  ;;  %v310_v8 = vpack.c.bf16 %v250_v4, %v247_v3 }
  0xd1   :  { %v317_v16 = vmax.bf16 %v1153_v15, %v301_v12  ;;  %v191_v24 = vadd.f32 %v1354_v0, %v190_v13  ;;  %v309_v57 = vpack.c.bf16 %v242_v48, %v239_v46  ;;  %v263_v2 = vadd.f32 %v1364_v19, %v1354_v0 }
  0xd2   :  { %v987_v18 = vpop.f32.mrf.mxu0  ;;  %v254_v23 = vpop.f32.mrf.mxu1  ;;  %v326_v14 = vmax.bf16 %v1153_v15, %v310_v8 }
  0xd3   :  { %v202_v20 = vadd.f32 %v987_v18, %v1354_v0  ;;  %1028 = vmatprep.mubr.bf16.mxu1 %v317_v16  ;;  %v255_v61 = vadd.f32 %v1354_v0, %v254_v23  ;;  %v325_v63 = vmax.bf16 %v1153_v15, %v309_v57 }
  0xd4   :  { %v193_v22 = vpop.f32.mrf.mxu0  ;;  %1029 = vmatmul.mubr.bf16.vlgmr.msra.gmra.mxu1 %v318_v17  ;;  %v1003_v28 = vpop.f32.mrf.mxu1 }
  0xd5   :  { %v194_v25 = vadd.f32 %v1354_v0, %v193_v22  ;;  %v304_v26 = vpack.c.bf16 %v202_v20, %v199_v21  ;;  %v266_v11 = vadd.f32 %v1003_v28, %v1354_v0 }
  0xd6   :  { %v990_v27 = vpop.f32.mrf.mxu0  ;;  %v257_v31 = vpop.f32.mrf.mxu1 }
  0xd7   :  { %v303_v29 = vpack.c.bf16 %v194_v25, %v191_v24  ;;  %v320_v34 = vmax.bf16 %v1153_v15, %v304_v26  ;;  %v215_v37 = vadd.f32 %v990_v27, %v1354_v0  ;;  %v258_v1 = vadd.f32 %v1354_v0, %v257_v31 }
  0xd8   :  { %v206_v30 = vpop.f32.mrf.mxu0  ;;  %v1006_v35 = vpop.f32.mrf.mxu1  ;;  %v312_v18 = vpack.c.bf16 %v266_v11, %v263_v2 }
  0xd9   :  { %v319_v32 = vmax.bf16 %v1153_v15, %v303_v29  ;;  %v207_v39 = vadd.f32 %v1354_v0, %v206_v30  ;;  %v311_v7 = vpack.c.bf16 %v258_v1, %v255_v61  ;;  %v279_v24 = vadd.f32 %v1006_v35, %v1354_v0  ;;  %v1129_v35 = vld [vmem:[%s1517_s5 + $0x8] sm:$0xff]  }
  0xda   :  { %v991_v33 = vpop.f32.mrf.mxu0  ;;  %v270_v43 = vpop.f32.mrf.mxu1  ;;  %v328_v25 = vmax.bf16 %v1153_v15, %v312_v18 }
  0xdb   :  { %v218_v36 = vadd.f32 %v991_v33, %v1354_v0  ;;  %1032 = vmatprep.mubr.bf16.mxu1 %v319_v32  ;;  %v271_v10 = vadd.f32 %v1354_v0, %v270_v43  ;;  %v327_v12 = vmax.bf16 %v1153_v15, %v311_v7 }
  0xdc   :  { %v209_v38 = vpop.f32.mrf.mxu0  ;;  %1033 = vmatmul.mubr.bf16.gmra.mxu1 %v320_v34  ;;  %v1007_v51 = vpop.f32.mrf.mxu1  ;;  %v1128_v34 = vld [vmem:[%s1517_s5 + $0x10] sm:$0xff]  }
  0xdd   :  { %v210_v40 = vadd.f32 %v1354_v0, %v209_v38  ;;  %v306_v41 = vpack.c.bf16 %v218_v36, %v215_v37  ;;  %v282_v19 = vadd.f32 %v1007_v51, %v1354_v0  ;;  %1070 = vmatprep.subr.bf16.mxu0 %v1128_v34  ;;  %v1422_v38 = vld [vmem:[%s1516_s4] ss:$0 sm:$0xff] }
  0xde   :  { %v994_v42 = vpop.f32.mrf.mxu0  ;;  %v273_v59 = vpop.f32.mrf.mxu1  ;;  %1071 = vmatpush3.bf16.msra.mxu0 %v1128_v34 }
  0xdf   :  { %v305_v44 = vpack.c.bf16 %v210_v40, %v207_v39  ;;  %v322_v50 = vmax.bf16 %v1153_v15, %v306_v41  ;;  %v231_v53 = vadd.f32 %v994_v42, %v1354_v0  ;;  %v274_v13 = vadd.f32 %v1354_v0, %v273_v59  ;;  %1072 = vmatprep.subr.bf16.mxu0 %v1129_v35 }
  0xe0   :  { %v222_v45 = vpop.f32.mrf.mxu0  ;;  %v1010_v6 = vpop.f32.mrf.mxu1  ;;  %v314_v27 = vpack.c.bf16 %v282_v19, %v279_v24 }
  0xe1   :  { %v321_v47 = vmax.bf16 %v1153_v15, %v305_v44  ;;  %v223_v55 = vadd.f32 %v1354_v0, %v222_v45  ;;  %v313_v17 = vpack.c.bf16 %v274_v13, %v271_v10  ;;  %v295_v29 = vadd.f32 %v1010_v6, %v1354_v0 }
  0xe2   :  { %v995_v49 = vpop.f32.mrf.mxu0  ;;  %v286_v9 = vpop.f32.mrf.mxu1  ;;  %v330_v31 = vmax.bf16 %v1153_v15, %v314_v27  ;;  %1073 = vmatpush3.bf16.msra.mxu0 %v1129_v35 }
  0xe3   :  { %v234_v52 = vadd.f32 %v995_v49, %v1354_v0  ;;  %1036 = vmatprep.mubr.bf16.mxu1 %v321_v47  ;;  %v287_v21 = vadd.f32 %v1354_v0, %v286_v9  ;;  %v329_v22 = vmax.bf16 %v1153_v15, %v313_v17 }
  0xe4   :  { %v225_v54 = vpop.f32.mrf.mxu0  ;;  %1037 = vmatmul.mubr.bf16.gmra.mxu1 %v322_v50  ;;  %v1011_v16 = vpop.f32.mrf.mxu1 }
  0xe5   :  { %v226_v56 = vadd.f32 %v1354_v0, %v225_v54  ;;  %v308_v58 = vpack.c.bf16 %v234_v52, %v231_v53  ;;  %v298_v30 = vadd.f32 %v1011_v16, %v1354_v0 }
  0xe6   :  { %v289_v20 = vpop.f32.mrf.mxu1 }
  0xe7   :  { %v307_v60 = vpack.c.bf16 %v226_v56, %v223_v55  ;;  %v324_v5 = vmax.bf16 %v1153_v15, %v308_v58  ;;  %v290_v23 = vadd.f32 %v1354_v0, %v289_v20  ;;  %v316_v32 = vpack.c.bf16 %v298_v30, %v295_v29  ;;  %v1130_v0 = vld [vmem:[%s1517_s5] sm:$0xff]  }
  0xe8   :  { %1074 = vmatprep.subr.bf16.mxu0 %v1130_v0 }
  0xe9   :  { %v323_v62 = vmax.bf16 %v1153_v15, %v307_v60  ;;  %v315_v26 = vpack.c.bf16 %v290_v23, %v287_v21  ;;  %v332_v33 = vmax.bf16 %v1153_v15, %v316_v32  ;;  %1075 = vmatpush3.bf16.msra.mxu0 %v1130_v0 }
  0xeb   :  { %1040 = vmatprep.mubr.bf16.mxu1 %v323_v62  ;;  %v331_v28 = vmax.bf16 %v1153_v15, %v315_v26 }
  0xec   :  { %1041 = vmatmul.mubr.bf16.gmra.mxu1 %v324_v5 }
  0xed   :  { %1044 = vmatprep.mubr.bf16.mxu1 %v325_v63 }
  0xf4   :  { %1045 = vmatmul.mubr.bf16.gmra.mxu1 %v326_v14 }
  0xf5   :  { %1048 = vmatprep.mubr.bf16.mxu1 %v327_v12 }
  0xfc   :  { %1049 = vmatmul.mubr.bf16.gmra.mxu1 %v328_v25 }
  0xfd   :  { %1052 = vmatprep.mubr.bf16.mxu1 %v329_v22 }
 0x104   :  { %1053 = vmatmul.mubr.bf16.gmra.mxu1 %v330_v31 }
 0x105   :  { %1056 = vmatprep.mubr.bf16.mxu1 %v331_v28 }
 0x10c   :  { %1057 = vmatmul.mubr.bf16.gmra.mxu1 %v332_v33 }
 0x194   :  { %v1030_v36 = vpop.f32.mrf.mxu1 }
 0x195   :  { %v447_v41 = vadd.f32 %v1030_v36, %v1422_v38 }
 0x196   :  { %v438_v37 = vpop.f32.mrf.mxu1 }
 0x197   :  { %v439_v43 = vadd.f32 %v1422_v38, %v438_v37 }
 0x198   :  { %v1031_v39 = vpop.f32.mrf.mxu1 }
 0x199   :  { %v450_v40 = vadd.f32 %v1031_v39, %v1422_v38 }
 0x19a   :  { %v441_v42 = vpop.f32.mrf.mxu1 }
 0x19b   :  { %v442_v44 = vadd.f32 %v1422_v38, %v441_v42  ;;  %v566_v45 = vpack.c.bf16 %v450_v40, %v447_v41 }
 0x19c   :  { %v1034_v46 = vpop.f32.mrf.mxu1 }
 0x19d   :  { %v565_v47 = vpack.c.bf16 %v442_v44, %v439_v43  ;;  %v582_v50 = vmax.bf16 %v1153_v15, %v566_v45  ;;  %v463_v53 = vadd.f32 %v1034_v46, %v1422_v38 }
 0x19e   :  { %v454_v48 = vpop.f32.mrf.mxu1 }
 0x19f   :  { %v581_v49 = vmax.bf16 %v1153_v15, %v565_v47  ;;  %v455_v55 = vadd.f32 %v1422_v38, %v454_v48 }
 0x1a0   :  { %v1035_v51 = vpop.f32.mrf.mxu1 }
 0x1a1   :  { %v466_v52 = vadd.f32 %v1035_v51, %v1422_v38  ;;  %1076 = vmatprep.mubr.bf16.mxu0 %v581_v49 }
 0x1a2   :  { %v457_v54 = vpop.f32.mrf.mxu1  ;;  %1077 = vmatmul.mubr.bf16.vlgmr.msra.gmra.mxu0 %v582_v50 }
 0x1a3   :  { %v458_v56 = vadd.f32 %v1422_v38, %v457_v54  ;;  %v568_v57 = vpack.c.bf16 %v466_v52, %v463_v53 }
 0x1a4   :  { %v1038_v58 = vpop.f32.mrf.mxu1 }
 0x1a5   :  { %v567_v59 = vpack.c.bf16 %v458_v56, %v455_v55  ;;  %v584_v63 = vmax.bf16 %v1153_v15, %v568_v57  ;;  %v479_v3 = vadd.f32 %v1038_v58, %v1422_v38 }
 0x1a6   :  { %v470_v60 = vpop.f32.mrf.mxu1 }
 0x1a7   :  { %v583_v61 = vmax.bf16 %v1153_v15, %v567_v59  ;;  %v471_v5 = vadd.f32 %v1422_v38, %v470_v60 }
 0x1a8   :  { %v1039_v62 = vpop.f32.mrf.mxu1 }
 0x1a9   :  { %v482_v1 = vadd.f32 %v1039_v62, %v1422_v38  ;;  %1080 = vmatprep.mubr.bf16.mxu0 %v583_v61 }
 0x1aa   :  { %v473_v4 = vpop.f32.mrf.mxu1  ;;  %1081 = vmatmul.mubr.bf16.gmra.mxu0 %v584_v63 }
 0x1ab   :  { %v474_v6 = vadd.f32 %v1422_v38, %v473_v4  ;;  %v570_v7 = vpack.c.bf16 %v482_v1, %v479_v3 }
 0x1ac   :  { %v1042_v8 = vpop.f32.mrf.mxu1 }
 0x1ad   :  { %v569_v9 = vpack.c.bf16 %v474_v6, %v471_v5  ;;  %v586_v2 = vmax.bf16 %v1153_v15, %v570_v7  ;;  %v495_v14 = vadd.f32 %v1042_v8, %v1422_v38 }
 0x1ae   :  { %v486_v10 = vpop.f32.mrf.mxu1 }
 0x1af   :  { %v585_v12 = vmax.bf16 %v1153_v15, %v569_v9  ;;  %v487_v17 = vadd.f32 %v1422_v38, %v486_v10  ;;  %v1475_v9 = vld [vmem:[%s1518_s6] ss:$0 sm:$0xff]  ;;  %s1154_s6 = smov [#allocation2]  }
 0x1b0   :  { %v1043_v13 = vpop.f32.mrf.mxu1  ;;  %s866_s27 = sshll.u32 %s1154_s6, 4  ;;  %s867_s27 = int_to_ptr.vmem [resolvable:$true] %s866_s27 }
 0x1b1   :  { %v498_v11 = vadd.f32 %v1043_v13, %v1422_v38  ;;  %1084 = vmatprep.mubr.bf16.mxu0 %v585_v12  ;;  %s1131_s28 = scalar_lea.vmem %s867_s27, 4096  ;;  %p1136_p1 = scmp.lt.s32.totalorder %s867_s27, %s867_s27 }
 0x1b2   :  { %v489_v16 = vpop.f32.mrf.mxu1  ;;  %1085 = vmatmul.mubr.bf16.gmra.mxu0 %v586_v2  ;;  %p1132_p0 = scmp.ne.s32.totalorder %s867_s27, %s1131_s28  ;;  %p1137_p2 = scmp.lt.s32.totalorder %s1131_s28, %s1131_s28 }
 0x1b3   :  { %v490_v18 = vadd.f32 %v1422_v38, %v489_v16  ;;  %v572_v20 = vpack.c.bf16 %v498_v11, %v495_v14 }
 0x1b4   :  { %v1046_v21 = vpop.f32.mrf.mxu1  ;;  %p1138_p3 = por %p1137_p2, %p1136_p1 }
 0x1b5   :  { %v571_v22 = vpack.c.bf16 %v490_v18, %v487_v17  ;;  %v588_v25 = vmax.bf16 %v1153_v15, %v572_v20  ;;  %v511_v27 = vadd.f32 %v1046_v21, %v1422_v38 }
 0x1b6   :  { %v502_v23 = vpop.f32.mrf.mxu1  ;;  %p1139_p4 = pnand %p1138_p3, %p1132_p0 }
 0x1b7   :  { %v587_v24 = vmax.bf16 %v1153_v15, %v571_v22  ;;  %v503_v29 = vadd.f32 %v1422_v38, %v502_v23 }
 0x1b8   :  { %v1047_v19 = vpop.f32.mrf.mxu1 }
 0x1b9   :  { %v514_v26 = vadd.f32 %v1047_v19, %v1422_v38  ;;  %1088 = vmatprep.mubr.bf16.mxu0 %v587_v24 }
 0x1ba   :  { %v505_v28 = vpop.f32.mrf.mxu1  ;;  %1089 = vmatmul.mubr.bf16.gmra.mxu0 %v588_v25 }
 0x1bb   :  { %v506_v30 = vadd.f32 %v1422_v38, %v505_v28  ;;  %v574_v31 = vpack.c.bf16 %v514_v26, %v511_v27 }
 0x1bc   :  { %v1050_v32 = vpop.f32.mrf.mxu1 }
 0x1bd   :  { %v573_v33 = vpack.c.bf16 %v506_v30, %v503_v29  ;;  %v590_v36 = vmax.bf16 %v1153_v15, %v574_v31  ;;  %v527_v39 = vadd.f32 %v1050_v32, %v1422_v38 }
 0x1be   :  { %v518_v34 = vpop.f32.mrf.mxu1 }
 0x1bf   :  { %v589_v35 = vmax.bf16 %v1153_v15, %v573_v33  ;;  %v519_v41 = vadd.f32 %v1422_v38, %v518_v34 }
 0x1c0   :  { %v1051_v0 = vpop.f32.mrf.mxu1 }
 0x1c1   :  { %v530_v37 = vadd.f32 %v1051_v0, %v1422_v38  ;;  %1092 = vmatprep.mubr.bf16.mxu0 %v589_v35 }
 0x1c2   :  { %v521_v40 = vpop.f32.mrf.mxu1  ;;  %1093 = vmatmul.mubr.bf16.gmra.mxu0 %v590_v36 }
 0x1c3   :  { %v522_v42 = vadd.f32 %v1422_v38, %v521_v40  ;;  %v576_v43 = vpack.c.bf16 %v530_v37, %v527_v39 }
 0x1c4   :  { %v1054_v44 = vpop.f32.mrf.mxu1 }
 0x1c5   :  { %v575_v45 = vpack.c.bf16 %v522_v42, %v519_v41  ;;  %v592_v49 = vmax.bf16 %v1153_v15, %v576_v43  ;;  %v543_v51 = vadd.f32 %v1054_v44, %v1422_v38 }
 0x1c6   :  { %v534_v46 = vpop.f32.mrf.mxu1 }
 0x1c7   :  { %v591_v47 = vmax.bf16 %v1153_v15, %v575_v45  ;;  %v535_v53 = vadd.f32 %v1422_v38, %v534_v46 }
 0x1c8   :  { %v1055_v48 = vpop.f32.mrf.mxu1 }
 0x1c9   :  { %v546_v50 = vadd.f32 %v1055_v48, %v1422_v38  ;;  %1096 = vmatprep.mubr.bf16.mxu0 %v591_v47 }
 0x1ca   :  { %v537_v52 = vpop.f32.mrf.mxu1  ;;  %1097 = vmatmul.mubr.bf16.gmra.mxu0 %v592_v49 }
 0x1cb   :  { %v538_v54 = vadd.f32 %v1422_v38, %v537_v52  ;;  %v578_v55 = vpack.c.bf16 %v546_v50, %v543_v51 }
 0x1cc   :  { %v1058_v56 = vpop.f32.mrf.mxu1 }
 0x1cd   :  { %v577_v57 = vpack.c.bf16 %v538_v54, %v535_v53  ;;  %v594_v61 = vmax.bf16 %v1153_v15, %v578_v55  ;;  %v559_v63 = vadd.f32 %v1058_v56, %v1422_v38 }
 0x1ce   :  { %v550_v58 = vpop.f32.mrf.mxu1 }
 0x1cf   :  { %v593_v59 = vmax.bf16 %v1153_v15, %v577_v57  ;;  %v551_v3 = vadd.f32 %v1422_v38, %v550_v58 }
 0x1d0   :  { %v1059_v60 = vpop.f32.mrf.mxu1 }
 0x1d1   :  { %v562_v62 = vadd.f32 %v1059_v60, %v1422_v38  ;;  %1100 = vmatprep.mubr.bf16.mxu0 %v593_v59 }
 0x1d2   :  { %v553_v1 = vpop.f32.mrf.mxu1  ;;  %1101 = vmatmul.mubr.bf16.gmra.mxu0 %v594_v61 }
 0x1d3   :  { %v554_v4 = vadd.f32 %v1422_v38, %v553_v1  ;;  %v580_v5 = vpack.c.bf16 %v562_v62, %v559_v63 }
 0x1d5   :  { %v579_v6 = vpack.c.bf16 %v554_v4, %v551_v3  ;;  %v596_v8 = vmax.bf16 %v1153_v15, %v580_v5 }
 0x1d7   :  { %v595_v7 = vmax.bf16 %v1153_v15, %v579_v6 }
 0x1d9   :  { %1104 = vmatprep.mubr.bf16.mxu0 %v595_v7 }
 0x1da   :  { %1105 = vmatmul.mubr.bf16.gmra.mxu0 %v596_v8 }
 0x262   :  { %v1078_v10 = vpop.f32.mrf.mxu0 }
 0x263   :  { %v711_v12 = vadd.f32 %v1078_v10, %v1475_v9 }
 0x264   :  { %v702_v13 = vpop.f32.mrf.mxu0 }
 0x265   :  { %831 = vst [vmem:[#allocation2 + $0x10] sm:$0xff] %v711_v12  ;;  %v703_v38 = vadd.f32 %v1475_v9, %v702_v13 }
 0x266   :  { %v1079_v2 = vpop.f32.mrf.mxu0 }
 0x267   :  { %829 = vst [vmem:[#allocation2] sm:$0xff] %v703_v38  ;;  %v714_v11 = vadd.f32 %v1079_v2, %v1475_v9 }
 0x268   :  { %v705_v14 = vpop.f32.mrf.mxu0 }
 0x269   :  { %832 = vst [vmem:[#allocation2 + $0x18] sm:$0xff] %v714_v11  ;;  %v706_v15 = vadd.f32 %v1475_v9, %v705_v14 }
 0x26a   :  { %v1082_v16 = vpop.f32.mrf.mxu0 }
 0x26b   :  { %830 = vst [vmem:[#allocation2 + $0x8] sm:$0xff] %v706_v15  ;;  %v727_v17 = vadd.f32 %v1082_v16, %v1475_v9 }
 0x26c   :  { %v718_v18 = vpop.f32.mrf.mxu0 }
 0x26d   :  { %835 = vst [vmem:[#allocation2 + $0x30] sm:$0xff] %v727_v17  ;;  %v719_v20 = vadd.f32 %v1475_v9, %v718_v18 }
 0x26e   :  { %v1083_v21 = vpop.f32.mrf.mxu0 }
 0x26f   :  { %833 = vst [vmem:[#allocation2 + $0x20] sm:$0xff] %v719_v20  ;;  %v730_v22 = vadd.f32 %v1083_v21, %v1475_v9 }
 0x270   :  { %v721_v23 = vpop.f32.mrf.mxu0 }
 0x271   :  { %836 = vst [vmem:[#allocation2 + $0x38] sm:$0xff] %v730_v22  ;;  %v722_v24 = vadd.f32 %v1475_v9, %v721_v23 }
 0x272   :  { %v1086_v19 = vpop.f32.mrf.mxu0 }
 0x273   :  { %834 = vst [vmem:[#allocation2 + $0x28] sm:$0xff] %v722_v24  ;;  %v743_v25 = vadd.f32 %v1086_v19, %v1475_v9 }
 0x274   :  { %v734_v26 = vpop.f32.mrf.mxu0 }
 0x275   :  { %839 = vst [vmem:[#allocation2 + $0x50] sm:$0xff] %v743_v25  ;;  %v735_v27 = vadd.f32 %v1475_v9, %v734_v26 }
 0x276   :  { %v1087_v28 = vpop.f32.mrf.mxu0 }
 0x277   :  { %837 = vst [vmem:[#allocation2 + $0x40] sm:$0xff] %v735_v27  ;;  %v746_v29 = vadd.f32 %v1087_v28, %v1475_v9 }
 0x278   :  { %v737_v30 = vpop.f32.mrf.mxu0 }
 0x279   :  { %840 = vst [vmem:[#allocation2 + $0x58] sm:$0xff] %v746_v29  ;;  %v738_v31 = vadd.f32 %v1475_v9, %v737_v30 }
 0x27a   :  { %v1090_v32 = vpop.f32.mrf.mxu0 }
 0x27b   :  { %838 = vst [vmem:[#allocation2 + $0x48] sm:$0xff] %v738_v31  ;;  %v759_v33 = vadd.f32 %v1090_v32, %v1475_v9 }
 0x27c   :  { %v750_v34 = vpop.f32.mrf.mxu0 }
 0x27d   :  { %843 = vst [vmem:[#allocation2 + $0x70] sm:$0xff] %v759_v33  ;;  %v751_v35 = vadd.f32 %v1475_v9, %v750_v34 }
 0x27e   :  { %v1091_v0 = vpop.f32.mrf.mxu0 }
 0x27f   :  { %841 = vst [vmem:[#allocation2 + $0x60] sm:$0xff] %v751_v35  ;;  %v762_v36 = vadd.f32 %v1091_v0, %v1475_v9 }
 0x280   :  { %v753_v37 = vpop.f32.mrf.mxu0 }
 0x281   :  { %844 = vst [vmem:[#allocation2 + $0x78] sm:$0xff] %v762_v36  ;;  %v754_v39 = vadd.f32 %v1475_v9, %v753_v37 }
 0x282   :  { %v1094_v40 = vpop.f32.mrf.mxu0 }
 0x283   :  { %842 = vst [vmem:[#allocation2 + $0x68] sm:$0xff] %v754_v39  ;;  %v775_v41 = vadd.f32 %v1094_v40, %v1475_v9 }
 0x284   :  { %v766_v42 = vpop.f32.mrf.mxu0 }
 0x285   :  { %847 = vst [vmem:[#allocation2 + $0x90] sm:$0xff] %v775_v41  ;;  %v767_v43 = vadd.f32 %v1475_v9, %v766_v42 }
 0x286   :  { %v1095_v44 = vpop.f32.mrf.mxu0 }
 0x287   :  { %845 = vst [vmem:[#allocation2 + $0x80] sm:$0xff] %v767_v43  ;;  %v778_v45 = vadd.f32 %v1095_v44, %v1475_v9 }
 0x288   :  { %v769_v46 = vpop.f32.mrf.mxu0 }
 0x289   :  { %848 = vst [vmem:[#allocation2 + $0x98] sm:$0xff] %v778_v45  ;;  %v770_v47 = vadd.f32 %v1475_v9, %v769_v46 }
 0x28a   :  { %v1098_v48 = vpop.f32.mrf.mxu0 }
 0x28b   :  { %846 = vst [vmem:[#allocation2 + $0x88] sm:$0xff] %v770_v47  ;;  %v791_v49 = vadd.f32 %v1098_v48, %v1475_v9 }
 0x28c   :  { %v782_v50 = vpop.f32.mrf.mxu0 }
 0x28d   :  { %851 = vst [vmem:[#allocation2 + $0xb0] sm:$0xff] %v791_v49  ;;  %v783_v51 = vadd.f32 %v1475_v9, %v782_v50 }
 0x28e   :  { %v1099_v52 = vpop.f32.mrf.mxu0 }
 0x28f   :  { %849 = vst [vmem:[#allocation2 + $0xa0] sm:$0xff] %v783_v51  ;;  %v794_v53 = vadd.f32 %v1099_v52, %v1475_v9 }
 0x290   :  { %v785_v54 = vpop.f32.mrf.mxu0 }
 0x291   :  { %852 = vst [vmem:[#allocation2 + $0xb8] sm:$0xff] %v794_v53  ;;  %v786_v55 = vadd.f32 %v1475_v9, %v785_v54 }
 0x292   :  { %v1102_v56 = vpop.f32.mrf.mxu0 }
 0x293   :  { %850 = vst [vmem:[#allocation2 + $0xa8] sm:$0xff] %v786_v55  ;;  %v807_v57 = vadd.f32 %v1102_v56, %v1475_v9 }
 0x294   :  { %v798_v58 = vpop.f32.mrf.mxu0 }
 0x295   :  { %855 = vst [vmem:[#allocation2 + $0xd0] sm:$0xff] %v807_v57  ;;  %v799_v59 = vadd.f32 %v1475_v9, %v798_v58 }
 0x296   :  { %v1103_v60 = vpop.f32.mrf.mxu0 }
 0x297   :  { %853 = vst [vmem:[#allocation2 + $0xc0] sm:$0xff] %v799_v59  ;;  %v810_v61 = vadd.f32 %v1103_v60, %v1475_v9 }
 0x298   :  { %v801_v62 = vpop.f32.mrf.mxu0 }
 0x299   :  { %856 = vst [vmem:[#allocation2 + $0xd8] sm:$0xff] %v810_v61  ;;  %v802_v63 = vadd.f32 %v1475_v9, %v801_v62 }
 0x29a   :  { %v1106_v1 = vpop.f32.mrf.mxu0 }
 0x29b   :  { %854 = vst [vmem:[#allocation2 + $0xc8] sm:$0xff] %v802_v63  ;;  %v823_v3 = vadd.f32 %v1106_v1, %v1475_v9 }
 0x29c   :  { %v814_v4 = vpop.f32.mrf.mxu0 }
 0x29d   :  { %859 = vst [vmem:[#allocation2 + $0xf0] sm:$0xff] %v823_v3  ;;  %v815_v5 = vadd.f32 %v1475_v9, %v814_v4 }
 0x29e   :  { %v1107_v6 = vpop.f32.mrf.mxu0 }
 0x29f   :  { %857 = vst [vmem:[#allocation2 + $0xe0] sm:$0xff] %v815_v5  ;;  %v826_v7 = vadd.f32 %v1107_v6, %v1475_v9 }
 0x2a0   :  { %v817_v8 = vpop.f32.mrf.mxu0 }
 0x2a1   :  { %860 = vst [vmem:[#allocation2 + $0xf8] sm:$0xff] %v826_v7  ;;  %v818_v10 = vadd.f32 %v1475_v9, %v817_v8 }
 0x2a3   :  { %858 = vst [vmem:[#allocation2 + $0xe8] sm:$0xff] %v818_v10 }
 0x2a4   :  { %1142 = shalt.err (!%p1139_p4)
}
 0x2a5   :  { %s1155_s29 = smov 128   ;;  %s1156_s30 = smov 8  }
 0x2a6   :  { %872 = dma.vmem_to_hbm [thread:$0]  %s867_s27, 4096, %s1519_s7, [#allocation3], %s1155_s29, %s1155_s29, %s1156_s30  }
 0x2a7   :  { %1151 = dma.done.wait [#allocation3], 4096  }
 0x2a8   :  { %1152 = vsyncadd [#allocation3], 4294963200 }
 0x2a9   :  { %876 = vsyncpa [#allocation3], 1 }

</bundles_post_ra>
